<compile_context>
chip_gen: v5e
topology: v5e:2x2
jax: 0.10.0
libtpu: 0.0.40
codegen_flags: <defaults>
</compile_context>

<pallas_src>
from functools import partial

import jax
import jax.numpy as jnp
from jax.experimental import pallas as pl
from jax.experimental.pallas import tpu as pltpu


# ----------------------------------------------------------------------------
# Kernel
# ----------------------------------------------------------------------------
def _make_mlp_kernel(num_layers):
    """Kernel computing the whole MLP for one batch tile.

    Activations are (d_pad, tile): batch on the lane axis.
    Refs: x_ref (d_pad, tile), w_ref (L, d_pad, d_pad), b_ref (L, d_pad, 1),
          out_ref (d_pad, tile).
    """

    def kernel(x_ref, w_ref, b_ref, out_ref):
        h = x_ref[...].astype(jnp.float32)              # (d_pad, tile)
        for i in range(num_layers):                     # static unroll
            w = w_ref[i]                                # (d_pad, d_pad)
            b = b_ref[i]                                # (d_pad, 1)
            # Lane-dense matmul: MXU N dim = batch tile, f32 accumulation.
            h = jnp.dot(w, h, preferred_element_type=jnp.float32) + b
            if i < num_layers - 1:                      # tanh on all but last
                h = jnp.tanh(h)
        out_ref[...] = h.astype(out_ref.dtype)

    return kernel


# ----------------------------------------------------------------------------
# Tiling helpers
# ----------------------------------------------------------------------------
def _num_tensorcores_per_chip():
    """Best-effort detection of TensorCores per chip for grid sharding."""
    try:
        kind = jax.devices()[0].device_kind.lower()
    except Exception:
        return 1
    if "lite" in kind or "v5e" in kind or "v6" in kind:
        return 1                     # v5e / v6e: single TensorCore per chip
    if "v7" in kind:
        return 2                     # v7x: 2 TensorCores per chip
    if "v4" in kind or "v5p" in kind or "v5" in kind:
        return 2                     # v4 / v5p megacore
    return 1                         # conservative default (fewest grid steps)


def _choose_tile(n, d_pad, tile_n, num_cores):
    """Pick the lane-axis batch tile and padded batch size."""
    # Lane-axis blocks must be multiples of 128; pad N up to at least 128.
    n_pad = max(128, pl.cdiv(n, 128) * 128)
    # vreg-pressure cap: keep the live (d_pad, tile) f32 activation under
    # ~128 KiB (half of the 64 x 4 KiB vector register file).
    vreg_cap = max(128, ((128 * 1024 // (4 * max(d_pad, 1))) // 128) * 128)
    cap = max(128, (min(tile_n, vreg_cap) // 128) * 128)
    if num_cores >= 2:
        # Exactly num_cores grid steps (one per TensorCore), widest tile.
        per_core = pl.cdiv(pl.cdiv(n_pad, num_cores), 128) * 128
        tile = min(cap, max(128, per_core))
    else:
        # Single TC: grid steps are purely serial -> one big tile if it fits.
        tile = min(cap, n_pad)
    n_pad = pl.cdiv(n_pad, tile) * tile
    assert n_pad % tile == 0
    return tile, n_pad


# ----------------------------------------------------------------------------
# Parameter packing (done once, outside the jitted forward)
# ----------------------------------------------------------------------------
def pack_fnn_params(weights, biases):
    """Zero-pad every layer to a common (d_pad, d_pad) square and stack.

    weights: list of (d_out_i, d_in_i) f32 (PyTorch nn.Linear layout)
    biases:  list of (d_out_i, 1) f32
    Zero rows/cols keep padded activation rows identically 0 through tanh,
    so the math is unchanged.
    """
    num_layers = len(weights)
    d_pad = max(max(w.shape) for w in weights)
    d_pad = max(8, pl.cdiv(d_pad, 8) * 8)           # sublane-align
    w_stack = jnp.zeros((num_layers, d_pad, d_pad), jnp.float32)
    b_stack = jnp.zeros((num_layers, d_pad, 1), jnp.float32)
    for i, (w, b) in enumerate(zip(weights, biases)):
        w_stack = w_stack.at[i, : w.shape[0], : w.shape[1]].set(w)
        b_stack = b_stack.at[i, : b.shape[0], :].set(b)
    return w_stack, b_stack


# ----------------------------------------------------------------------------
# Jitted forward
# ----------------------------------------------------------------------------
@partial(jax.jit, static_argnames=("d_out", "tile_n", "num_cores"))
def fnn_forward(x, w_stack, b_stack, *, d_out, tile_n=1024, num_cores=1):
    """Fnn forward pass as a single Pallas kernel.

    x:        (N, D_in) float32
    w_stack:  (L, d_pad, d_pad) float32 (zero-padded, PyTorch (out,in) layout)
    b_stack:  (L, d_pad, 1) float32
    Returns (N, d_out) float32.
    """
    n, d_in = x.shape
    num_layers, d_pad, _ = w_stack.shape

    tile, n_pad = _choose_tile(n, d_pad, tile_n, num_cores)
    grid = n_pad // tile

    # Layout plumbing (fused under jit): batch -> lane axis, zero-pad features
    # to d_pad and batch to n_pad.
    x_t = jnp.pad(x.T.astype(jnp.float32),
                  ((0, d_pad - d_in), (0, n_pad - n)))   # (d_pad, n_pad)

    kernel = _make_mlp_kernel(num_layers)

    in_specs = [
        pl.BlockSpec((d_pad, tile), lambda i: (0, i)),          # x: tiled
        # Weights / biases: full-array blocks with constant index maps; they
        # stay resident in VMEM and are only DMA'd on the first grid step.
        pl.BlockSpec((num_layers, d_pad, d_pad), lambda i: (0, 0, 0)),
        pl.BlockSpec((num_layers, d_pad, 1), lambda i: (0, 0, 0)),
    ]
    out_spec = pl.BlockSpec((d_pad, tile), lambda i: (0, i))

    out_t = pl.pallas_call(
        kernel,
        out_shape=jax.ShapeDtypeStruct((d_pad, n_pad), x.dtype),
        grid_spec=pltpu.PrefetchScalarGridSpec(
            num_scalar_prefetch=0,
            grid=(grid,),
            in_specs=in_specs,
            out_specs=out_spec,
        ),
        compiler_params=pltpu.CompilerParams(
            dimension_semantics=("parallel",),          # megacore sharding
            vmem_limit_bytes=32 * 1024 * 1024,          # safe on v5e/v6e/v7x
        ),
    )(x_t, w_stack, b_stack)

    # Back to the PyTorch-facing (N, d_out) layout, dropping the pad rows/cols.
    return out_t[:d_out, :n].T


def fnn_apply(x, weights, biases, *, tile_n=1024, num_cores=None):
    """Convenience wrapper: packs params and dispatches the jitted forward."""
    if num_cores is None:
        num_cores = _num_tensorcores_per_chip()
    w_stack, b_stack = pack_fnn_params(weights, biases)
    return fnn_forward(x, w_stack, b_stack, d_out=weights[-1].shape[0],
                       tile_n=tile_n, num_cores=num_cores)


# ----------------------------------------------------------------------------
# Init + reference
# ----------------------------------------------------------------------------
def init_fnn_params(key, layers_size):
    """Deterministic init matching nn.Linear's layout (uniform +-1/sqrt(fan_in)).

    Weights kept in PyTorch (out, in) layout; biases as (out, 1).
    """
    if len(layers_size) < 4:
        raise ValueError("network too shallow")
    weights, biases = [], []
    for i in range(len(layers_size) - 1):
        fan_in, fan_out = layers_size[i], layers_size[i + 1]
        key, kw, kb = jax.random.split(key, 3)
        bound = 1.0 / jnp.sqrt(fan_in)
        w = jax.random.uniform(kw, (fan_out, fan_in), jnp.float32, -bound, bound)
        b = jax.random.uniform(kb, (fan_out, 1), jnp.float32, -bound, bound)
        weights.append(w)
        biases.append(b)
    return weights, biases


def fnn_reference(x, weights, biases):
    h = x
    for i, (w, b) in enumerate(zip(weights, biases)):
        h = h @ w.T + b.T
        if i < len(weights) - 1:
            h = jnp.tanh(h)
    return h


# TODO(synk): dropout=True path (nn.Dropout(p=0.1)) is not implemented; the
# reference module is used with dropout=False (inference-equivalent anyway).

if __name__ == "__main__":
    # Fnn(layers_size=[4, 32, 32, 32, 2], dropout=False)
    layers_size = [4, 32, 32, 32, 2]
    batch = 200  # not a multiple of 128 -> exercises batch padding

    key = jax.random.PRNGKey(0)
    key, kx = jax.random.split(key)
    x = jax.random.normal(kx, (batch, layers_size[0]), jnp.float32)

    weights, biases = init_fnn_params(key, layers_size)

    # Pack parameters once (outside the jitted hot path), then run.
    w_stack, b_stack = pack_fnn_params(weights, biases)
    num_cores = _num_tensorcores_per_chip()
    out = fnn_forward(x, w_stack, b_stack, d_out=layers_size[-1],
                      num_cores=num_cores)
    out = jax.block_until_ready(out)

    ref = fnn_reference(x, weights, biases)
    assert out.shape == (batch, layers_size[-1])
    assert jnp.allclose(out, ref, atol=1e-5, rtol=1e-5), "mismatch vs reference"

    print("KERNEL_OK")
</pallas_src>

<mosaic_0001>
module attributes {stable_mosaic.version = 11 : i64} {
  func.func @kernel(%arg0: i32, %arg1: memref<32x256xf32, #tpu.memory_space<vmem>>, %arg2: memref<4x32x32xf32, #tpu.memory_space<vmem>>, %arg3: memref<4x32x1xf32, #tpu.memory_space<vmem>>, %arg4: memref<32x256xf32, #tpu.memory_space<vmem>>) attributes {dimension_semantics = [#tpu.dimension_semantics<parallel>], iteration_bounds = array<i64: 1>, scalar_prefetch = 0 : i64, scratch_operands = 0 : i64, tpu.core_type = #tpu.core_type<tc>, window_params = [{transform_indices = @transform_0, window_bounds = array<i64: 32, 256>}, {pipeline_mode = #tpu.pipeline_mode<synchronous>, transform_indices = @transform_1, window_bounds = array<i64: 4, 32, 32>}, {pipeline_mode = #tpu.pipeline_mode<synchronous>, transform_indices = @transform_2, window_bounds = array<i64: 4, 32, 1>}, {transform_indices = @transform_3, window_bounds = array<i64: 32, 256>}]} {
    %c0 = arith.constant 0 : index
    %c0_0 = arith.constant 0 : index
    %0 = vector.load %arg1[%c0, %c0_0] : memref<32x256xf32, #tpu.memory_space<vmem>>, vector<32x256xf32>
    %c0_1 = arith.constant 0 : index
    %c0_2 = arith.constant 0 : index
    %c0_3 = arith.constant 0 : index
    %1 = vector.load %arg2[%c0_1, %c0_2, %c0_3] : memref<4x32x32xf32, #tpu.memory_space<vmem>>, vector<1x32x32xf32>
    %2 = vector.shape_cast %1 : vector<1x32x32xf32> to vector<32x32xf32>
    %c0_4 = arith.constant 0 : index
    %c0_5 = arith.constant 0 : index
    %c0_6 = arith.constant 0 : index
    %3 = vector.load %arg3[%c0_4, %c0_5, %c0_6] : memref<4x32x1xf32, #tpu.memory_space<vmem>>, vector<1x32x1xf32>
    %4 = vector.shape_cast %3 : vector<1x32x1xf32> to vector<32x1xf32>
    %cst = arith.constant dense<0.000000e+00> : vector<32x256xf32>
    %5 = tpu.matmul %2, %0, %cst {dimension_numbers = #tpu.dot_dimension_numbers<[1], [0], [0], [1], [0, 0, 1, 1], [], []>} : vector<32x32xf32>, vector<32x256xf32>, vector<32x256xf32> -> vector<32x256xf32>
    %6 = vector.broadcast %4 : vector<32x1xf32> to vector<32x256xf32>
    %7 = arith.addf %5, %6 : vector<32x256xf32>
    %8 = math.tanh %7 : vector<32x256xf32>
    %c1 = arith.constant 1 : index
    %c0_7 = arith.constant 0 : index
    %c0_8 = arith.constant 0 : index
    %9 = vector.load %arg2[%c1, %c0_7, %c0_8] : memref<4x32x32xf32, #tpu.memory_space<vmem>>, vector<1x32x32xf32>
    %10 = vector.shape_cast %9 : vector<1x32x32xf32> to vector<32x32xf32>
    %c1_9 = arith.constant 1 : index
    %c0_10 = arith.constant 0 : index
    %c0_11 = arith.constant 0 : index
    %11 = vector.load %arg3[%c1_9, %c0_10, %c0_11] : memref<4x32x1xf32, #tpu.memory_space<vmem>>, vector<1x32x1xf32>
    %12 = vector.shape_cast %11 : vector<1x32x1xf32> to vector<32x1xf32>
    %cst_12 = arith.constant dense<0.000000e+00> : vector<32x256xf32>
    %13 = tpu.matmul %10, %8, %cst_12 {dimension_numbers = #tpu.dot_dimension_numbers<[1], [0], [0], [1], [0, 0, 1, 1], [], []>} : vector<32x32xf32>, vector<32x256xf32>, vector<32x256xf32> -> vector<32x256xf32>
    %14 = vector.broadcast %12 : vector<32x1xf32> to vector<32x256xf32>
    %15 = arith.addf %13, %14 : vector<32x256xf32>
    %16 = math.tanh %15 : vector<32x256xf32>
    %c2 = arith.constant 2 : index
    %c0_13 = arith.constant 0 : index
    %c0_14 = arith.constant 0 : index
    %17 = vector.load %arg2[%c2, %c0_13, %c0_14] : memref<4x32x32xf32, #tpu.memory_space<vmem>>, vector<1x32x32xf32>
    %18 = vector.shape_cast %17 : vector<1x32x32xf32> to vector<32x32xf32>
    %c2_15 = arith.constant 2 : index
    %c0_16 = arith.constant 0 : index
    %c0_17 = arith.constant 0 : index
    %19 = vector.load %arg3[%c2_15, %c0_16, %c0_17] : memref<4x32x1xf32, #tpu.memory_space<vmem>>, vector<1x32x1xf32>
    %20 = vector.shape_cast %19 : vector<1x32x1xf32> to vector<32x1xf32>
    %cst_18 = arith.constant dense<0.000000e+00> : vector<32x256xf32>
    %21 = tpu.matmul %18, %16, %cst_18 {dimension_numbers = #tpu.dot_dimension_numbers<[1], [0], [0], [1], [0, 0, 1, 1], [], []>} : vector<32x32xf32>, vector<32x256xf32>, vector<32x256xf32> -> vector<32x256xf32>
    %22 = vector.broadcast %20 : vector<32x1xf32> to vector<32x256xf32>
    %23 = arith.addf %21, %22 : vector<32x256xf32>
    %24 = math.tanh %23 : vector<32x256xf32>
    %c3 = arith.constant 3 : index
    %c0_19 = arith.constant 0 : index
    %c0_20 = arith.constant 0 : index
    %25 = vector.load %arg2[%c3, %c0_19, %c0_20] : memref<4x32x32xf32, #tpu.memory_space<vmem>>, vector<1x32x32xf32>
    %26 = vector.shape_cast %25 : vector<1x32x32xf32> to vector<32x32xf32>
    %c3_21 = arith.constant 3 : index
    %c0_22 = arith.constant 0 : index
    %c0_23 = arith.constant 0 : index
    %27 = vector.load %arg3[%c3_21, %c0_22, %c0_23] : memref<4x32x1xf32, #tpu.memory_space<vmem>>, vector<1x32x1xf32>
    %28 = vector.shape_cast %27 : vector<1x32x1xf32> to vector<32x1xf32>
    %cst_24 = arith.constant dense<0.000000e+00> : vector<32x256xf32>
    %29 = tpu.matmul %26, %24, %cst_24 {dimension_numbers = #tpu.dot_dimension_numbers<[1], [0], [0], [1], [0, 0, 1, 1], [], []>} : vector<32x32xf32>, vector<32x256xf32>, vector<32x256xf32> -> vector<32x256xf32>
    %30 = vector.broadcast %28 : vector<32x1xf32> to vector<32x256xf32>
    %31 = arith.addf %29, %30 : vector<32x256xf32>
    %c0_25 = arith.constant 0 : index
    %c0_26 = arith.constant 0 : index
    %32 = vector.load %arg4[%c0_25, %c0_26] : memref<32x256xf32, #tpu.memory_space<vmem>>, vector<32x256xf32>
    tpu.vector_store %arg4[%c0_25, %c0_26], %31 {strides = array<i32>} : memref<32x256xf32, #tpu.memory_space<vmem>>, vector<32x256xf32>,
    return
  }
  func.func @transform_0(%arg0: i32) -> (i32, i32) {
    %c0_i32 = arith.constant 0 : i32
    %c0_i32_0 = arith.constant 0 : i32
    return %c0_i32, %arg0 : i32, i32
  }
  func.func @transform_1(%arg0: i32) -> (i32, i32, i32) {
    %c0_i32 = arith.constant 0 : i32
    %c0_i32_0 = arith.constant 0 : i32
    %c0_i32_1 = arith.constant 0 : i32
    %c0_i32_2 = arith.constant 0 : i32
    return %c0_i32, %c0_i32_0, %c0_i32_1 : i32, i32, i32
  }
  func.func @transform_2(%arg0: i32) -> (i32, i32, i32) {
    %c0_i32 = arith.constant 0 : i32
    %c0_i32_0 = arith.constant 0 : i32
    %c0_i32_1 = arith.constant 0 : i32
    %c0_i32_2 = arith.constant 0 : i32
    return %c0_i32, %c0_i32_0, %c0_i32_1 : i32, i32, i32
  }
  func.func @transform_3(%arg0: i32) -> (i32, i32) {
    %c0_i32 = arith.constant 0 : i32
    %c0_i32_0 = arith.constant 0 : i32
    return %c0_i32, %arg0 : i32, i32
  }
}

</mosaic_0001>

<bundles_post_ra>
// kernel: fnn_forward.1
= control target key start
LH: loop header
LB: loop body
LE: loop exit
PB: predicated region body
PF: predicated region fallthrough
CT: control target
= control target key end

     0   :  { %v565_v0 = vmov 0   ;;  %vm50_vm0 = vcmask 261120   ;;  %s762_s2 = inlined_call_operand.vmem [shape: f32[4,32,1], index: 2, kind: input, shape index: {}]   ;;  %s763_s0 = inlined_call_operand.vmem [shape: f32[32,256], index: 0, kind: input, shape index: {}]   ;;  %s764_s1 = inlined_call_operand.vmem [shape: f32[4,32,32], index: 1, kind: input, shape index: {}]   ;;  %s765_s3 = inlined_call_operand.vmem [shape: f32[32,256], index: 3, kind: output, shape index: {}]  }
   0x1   :  { %514 = vset.pattern.permute.xlu0 %v565_v0  ;;  %v29_v1 = vld [vmem:[%s762_s2 + $0x18] sm:$0xff]  ;;  %v20_v2 = vld [vmem:[%s763_s0 + $0x30] sm:$0xff]  ;;  %515 = vset.pattern.permute.xlu1 %v565_v0  ;;  %v18_v4 = vld [vmem:[%s763_s0 + $0x20] sm:$0xff] }
   0x2   :  { %v21_v3 = vld [vmem:[%s763_s0 + $0x38] sm:$0xff]  ;;  %47 = vperm.xlu0 %514, %v29_v1   ;;  %75 = vmatpush.msra.mxu0 %v20_v2  ;;  %v19_v5 = vld [vmem:[%s763_s0 + $0x28] sm:$0xff]  ;;  %v16_v6 = vld [vmem:[%s763_s0 + $0x10] sm:$0xff] }
   0x3   :  { %104 = vmatpush.msra.mxu1 %v21_v3  ;;  %516 = vset.pattern.permute.xlu2 %v565_v0  ;;  %v17_v7 = vld [vmem:[%s763_s0 + $0x18] sm:$0xff]  ;;  %v27_v8 = vld [vmem:[%s762_s2 + $0x8] sm:$0xff]  ;;  %v14_v9 = vld [vmem:[%s763_s0] sm:$0xff] }
   0x4   :  { %76 = vmatpush.msra.mxu0 %v18_v4  ;;  %37 = vperm.xlu1 %515, %v27_v8   ;;  %v15_v10 = vld [vmem:[%s763_s0 + $0x8] sm:$0xff]  ;;  %v22_v11 = vld [vmem:[%s764_s1] sm:$0xff]  ;;  %v28_v12 = vld [vmem:[%s762_s2 + $0x10] sm:$0xff] }
   0x5   :  { %105 = vmatpush.msra.mxu1 %v19_v5  ;;  %v26_v13 = vld [vmem:[%s762_s2] sm:$0xff]  ;;  %v23_v14 = vld [vmem:[%s764_s1 + $0x8] sm:$0xff]  ;;  %v24_v17 = vld [vmem:[%s764_s1 + $0x10] sm:$0xff] }
   0x6   :  { %77 = vmatpush.msra.mxu0 %v16_v6  ;;  %v470_v15 = vld [vmem:[%s762_s2 + $0x28] sm:$0xff]  ;;  %v469_v16 = vld [vmem:[%s762_s2 + $0x20] sm:$0xff]  ;;  %v487_v18 = vld [vmem:[%s762_s2 + $0x50] sm:$0xff] }
   0x7   :  { %106 = vmatpush.msra.mxu1 %v17_v7  ;;  %v486_v19 = vld [vmem:[%s762_s2 + $0x48] sm:$0xff]  ;;  %v25_v20 = vld [vmem:[%s764_s1 + $0x18] sm:$0xff]  ;;  %v501_v21 = vld [vmem:[%s762_s2 + $0x60] sm:$0xff] }
   0x8   :  { %78 = vmatpush.msra.mxu0 %v14_v9  ;;  %v502_v22 = vld [vmem:[%s762_s2 + $0x68] sm:$0xff]  ;;  %v504_v23 = vld [vmem:[%s762_s2 + $0x78] sm:$0xff]  ;;  %v465_v51 = vld [vmem:[%s764_s1 + $0x20] sm:$0xff] }
   0x9   :  { %107 = vmatpush.msra.mxu1 %v15_v10  ;;  %457 = vmatmul.msk.f32.vlgmr.msra.gmra.mxu0 %vm50_vm0, %v22_v11  ;;  %v472_v46 = vld [vmem:[%s762_s2 + $0x38] sm:$0xff]  ;;  %v471_v54 = vld [vmem:[%s762_s2 + $0x30] sm:$0xff]  ;;  %v466_v55 = vld [vmem:[%s764_s1 + $0x28] sm:$0xff] }
   0xa   :  { %461 = vmatmul.msk.f32.vlgmr.msra.gmra.mxu1 %vm50_vm0, %v22_v11  ;;  %42 = vperm.xlu0 %514, %v28_v12   ;;  %v488_v56 = vld [vmem:[%s762_s2 + $0x58] sm:$0xff]  ;;  %v467_v57 = vld [vmem:[%s764_s1 + $0x30] sm:$0xff]  ;;  %v485_v58 = vld [vmem:[%s762_s2 + $0x40] sm:$0xff] }
   0xb   :  { %156 = vperm.xlu2 %516, %v472_v46   ;;  %v468_v59 = vld [vmem:[%s764_s1 + $0x38] sm:$0xff]  ;;  %v503_v60 = vld [vmem:[%s762_s2 + $0x70] sm:$0xff] }
   0xc   :  { %32 = vperm.xlu1 %515, %v26_v13  }
  0x11   :  { %458 = vmatmul.msk.f32.gmra.mxu0 %vm50_vm0, %v23_v14 }
  0x12   :  { %462 = vmatmul.msk.f32.gmra.mxu1 %vm50_vm0, %v23_v14  ;;  %146 = vperm.xlu0 %514, %v470_v15  }
  0x13   :  { %151 = vperm.xlu2 %516, %v471_v54  }
  0x14   :  { %141 = vperm.xlu1 %515, %v469_v16  }
  0x19   :  { %459 = vmatmul.msk.f32.gmra.mxu0 %vm50_vm0, %v24_v17 }
  0x1a   :  { %463 = vmatmul.msk.f32.gmra.mxu1 %vm50_vm0, %v24_v17  ;;  %259 = vperm.xlu0 %514, %v487_v18  }
  0x1b   :  { %264 = vperm.xlu2 %516, %v488_v56  }
  0x1c   :  { %254 = vperm.xlu1 %515, %v486_v19  }
  0x21   :  { %460 = vmatmul.msk.f32.gmra.mxu0 %vm50_vm0, %v25_v20 }
  0x22   :  { %464 = vmatmul.msk.f32.gmra.mxu1 %vm50_vm0, %v25_v20  ;;  %357 = vperm.xlu0 %514, %v501_v21  }
  0x23   :  { %249 = vperm.xlu2 %516, %v485_v58   ;;  %v498_v58 = vld [vmem:[%s764_s1 + $0x68] sm:$0xff] }
  0x24   :  { %362 = vperm.xlu1 %515, %v502_v22  }
  0x2a   :  { %372 = vperm.xlu0 %514, %v504_v23   ;;  %v481_v23 = vld [vmem:[%s764_s1 + $0x40] sm:$0xff] }
  0x2b   :  { %367 = vperm.xlu2 %516, %v503_v60   ;;  %v500_v60 = vld [vmem:[%s764_s1 + $0x78] sm:$0xff] }
  0x65   :  { %v157_v1 = vpop.permute.xlu2 %156 }
  0x6d   :  { %v152_v4 = vpop.permute.xlu2 %151 }
  0x74   :  { %v48_v28 = vpop.permute.xlu0 %47 }
  0x76   :  { %v38_v31 = vpop.permute.xlu1 %37 }
  0x7c   :  { %v43_v32 = vpop.permute.xlu0 %42 }
  0x7e   :  { %v33_v40 = vpop.permute.xlu1 %32 }
  0x84   :  { %v147_v9 = vpop.permute.xlu0 %146 }
  0x86   :  { %v80_v24 = vpop.f32.mrf.mxu0  ;;  %v142_v13 = vpop.permute.xlu1 %141 }
  0x87   :  { %v109_v25 = vpop.f32.mrf.mxu1  ;;  %v81_v42 = vadd.f32 %v80_v24, %v33_v40 }
  0x88   :  { %v110_v43 = vadd.f32 %v109_v25, %v33_v40 }
  0x8e   :  { %v83_v26 = vpop.f32.mrf.mxu0 }
  0x8f   :  { %v112_v27 = vpop.f32.mrf.mxu1  ;;  %v84_v39 = vadd.f32 %v83_v26, %v38_v31  ;;  %v482_v26 = vld [vmem:[%s764_s1 + $0x48] sm:$0xff] }
  0x90   :  { %v113_v41 = vadd.f32 %v112_v27, %v38_v31  ;;  %v483_v27 = vld [vmem:[%s764_s1 + $0x50] sm:$0xff] }
  0x96   :  { %v86_v29 = vpop.f32.mrf.mxu0 }
  0x97   :  { %v115_v30 = vpop.f32.mrf.mxu1  ;;  %v87_v34 = vadd.f32 %v86_v29, %v43_v32 }
  0x98   :  { %v116_v37 = vadd.f32 %v115_v30, %v43_v32 }
  0x9e   :  { %v89_v33 = vpop.f32.mrf.mxu0 }
  0x9f   :  { %v90_v35 = vadd.f32 %v89_v33, %v48_v28  ;;  %v118_v36 = vpop.f32.mrf.mxu1 }
  0xa0   :  { %v119_v38 = vadd.f32 %v118_v36, %v48_v28  ;;  %v484_v28 = vld [vmem:[%s764_s1 + $0x58] sm:$0xff]  ;;  %v260_v36 = vpop.permute.xlu0 %259 }
  0xa1   :  { %517 = vtanh.f32 %v90_v35  ;;  %v265_v35 = vpop.permute.xlu2 %264 }
  0xa2   :  { %519 = vtanh.f32 %v119_v38 }
  0xa3   :  { %521 = vtanh.f32 %v87_v34 }
  0xa4   :  { %523 = vtanh.f32 %v116_v37 }
  0xa5   :  { %525 = vtanh.f32 %v84_v39 }
  0xa6   :  { %527 = vtanh.f32 %v113_v41  ;;  %v255_v41 = vpop.permute.xlu1 %254 }
  0xa7   :  { %v518_v44 = vpop.eup %517  ;;  %529 = vtanh.f32 %v81_v42 }
  0xa8   :  { %v520_v45 = vpop.eup %519  ;;  %531 = vtanh.f32 %v110_v43  ;;  %183 = vmatpush.msra.mxu2 %v518_v44 }
  0xa9   :  { %v522_v47 = vpop.eup %521  ;;  %212 = vmatpush.msra.mxu3 %v520_v45  ;;  %v250_v45 = vpop.permute.xlu2 %249 }
  0xaa   :  { %v524_v48 = vpop.eup %523  ;;  %184 = vmatpush.msra.mxu2 %v522_v47 }
  0xab   :  { %v526_v49 = vpop.eup %525  ;;  %213 = vmatpush.msra.mxu3 %v524_v48 }
  0xac   :  { %v528_v50 = vpop.eup %527  ;;  %185 = vmatpush.msra.mxu2 %v526_v49 }
  0xad   :  { %v530_v52 = vpop.eup %529  ;;  %214 = vmatpush.msra.mxu3 %v528_v50 }
  0xae   :  { %v532_v53 = vpop.eup %531  ;;  %186 = vmatpush.msra.mxu2 %v530_v52 }
  0xaf   :  { %215 = vmatpush.msra.mxu3 %v532_v53  ;;  %473 = vmatmul.msk.f32.vlgmr.msra.gmra.mxu2 %vm50_vm0, %v465_v51 }
  0xb0   :  { %477 = vmatmul.msk.f32.vlgmr.msra.gmra.mxu3 %vm50_vm0, %v465_v51 }
  0xb7   :  { %474 = vmatmul.msk.f32.gmra.mxu2 %vm50_vm0, %v466_v55 }
  0xb8   :  { %478 = vmatmul.msk.f32.gmra.mxu3 %vm50_vm0, %v466_v55  ;;  %v497_v55 = vld [vmem:[%s764_s1 + $0x60] sm:$0xff] }
  0xbf   :  { %475 = vmatmul.msk.f32.gmra.mxu2 %vm50_vm0, %v467_v57 }
  0xc0   :  { %479 = vmatmul.msk.f32.gmra.mxu3 %vm50_vm0, %v467_v57 }
  0xc7   :  { %476 = vmatmul.msk.f32.gmra.mxu2 %vm50_vm0, %v468_v59 }
  0xc8   :  { %480 = vmatmul.msk.f32.gmra.mxu3 %vm50_vm0, %v468_v59  ;;  %v499_v59 = vld [vmem:[%s764_s1 + $0x70] sm:$0xff] }
 0x132   :  { %v188_v61 = vpop.f32.mrf.mxu2 }
 0x133   :  { %v217_v62 = vpop.f32.mrf.mxu3  ;;  %v189_v15 = vadd.f32 %v188_v61, %v142_v13  ;;  %v358_v61 = vpop.permute.xlu0 %357 }
 0x134   :  { %v218_v16 = vadd.f32 %v217_v62, %v142_v13 }
 0x13a   :  { %v191_v63 = vpop.f32.mrf.mxu2 }
 0x13b   :  { %v220_v0 = vpop.f32.mrf.mxu3  ;;  %v192_v12 = vadd.f32 %v191_v63, %v147_v9 }
 0x13c   :  { %v221_v14 = vadd.f32 %v220_v0, %v147_v9 }
 0x142   :  { %v194_v2 = vpop.f32.mrf.mxu2 }
 0x143   :  { %v223_v3 = vpop.f32.mrf.mxu3  ;;  %v195_v6 = vadd.f32 %v194_v2, %v152_v4  ;;  %v363_v2 = vpop.permute.xlu1 %362 }
 0x144   :  { %v224_v10 = vadd.f32 %v223_v3, %v152_v4 }
 0x14a   :  { %v197_v5 = vpop.f32.mrf.mxu2 }
 0x14b   :  { %v198_v7 = vadd.f32 %v197_v5, %v157_v1  ;;  %v226_v8 = vpop.f32.mrf.mxu3 }
 0x14c   :  { %v227_v11 = vadd.f32 %v226_v8, %v157_v1 }
 0x14d   :  { %533 = vtanh.f32 %v198_v7  ;;  %v368_v7 = vpop.permute.xlu2 %367 }
 0x14e   :  { %535 = vtanh.f32 %v227_v11 }
 0x14f   :  { %537 = vtanh.f32 %v195_v6 }
 0x150   :  { %539 = vtanh.f32 %v224_v10 }
 0x151   :  { %541 = vtanh.f32 %v192_v12  ;;  %v373_v12 = vpop.permute.xlu0 %372 }
 0x152   :  { %543 = vtanh.f32 %v221_v14 }
 0x153   :  { %v534_v17 = vpop.eup %533  ;;  %545 = vtanh.f32 %v189_v15 }
 0x154   :  { %v536_v18 = vpop.eup %535  ;;  %547 = vtanh.f32 %v218_v16  ;;  %291 = vmatpush.msrb.mxu0 %v534_v17 }
 0x155   :  { %v538_v19 = vpop.eup %537  ;;  %320 = vmatpush.msrb.mxu1 %v536_v18 }
 0x156   :  { %v540_v20 = vpop.eup %539  ;;  %292 = vmatpush.msrb.mxu0 %v538_v19 }
 0x157   :  { %v542_v21 = vpop.eup %541  ;;  %321 = vmatpush.msrb.mxu1 %v540_v20 }
 0x158   :  { %v544_v22 = vpop.eup %543  ;;  %293 = vmatpush.msrb.mxu0 %v542_v21 }
 0x159   :  { %v546_v24 = vpop.eup %545  ;;  %322 = vmatpush.msrb.mxu1 %v544_v22 }
 0x15a   :  { %v548_v25 = vpop.eup %547  ;;  %294 = vmatpush.msrb.mxu0 %v546_v24 }
 0x15b   :  { %323 = vmatpush.msrb.mxu1 %v548_v25  ;;  %489 = vmatmul.msk.f32.vlgmr.msrb.gmra.mxu0 %vm50_vm0, %v481_v23 }
 0x15c   :  { %493 = vmatmul.msk.f32.vlgmr.msrb.gmra.mxu1 %vm50_vm0, %v481_v23 }
 0x163   :  { %490 = vmatmul.msk.f32.gmra.mxu0 %vm50_vm0, %v482_v26 }
 0x164   :  { %494 = vmatmul.msk.f32.gmra.mxu1 %vm50_vm0, %v482_v26 }
 0x16b   :  { %491 = vmatmul.msk.f32.gmra.mxu0 %vm50_vm0, %v483_v27 }
 0x16c   :  { %495 = vmatmul.msk.f32.gmra.mxu1 %vm50_vm0, %v483_v27 }
 0x173   :  { %492 = vmatmul.msk.f32.gmra.mxu0 %vm50_vm0, %v484_v28 }
 0x174   :  { %496 = vmatmul.msk.f32.gmra.mxu1 %vm50_vm0, %v484_v28 }
 0x1d8   :  { %v296_v29 = vpop.f32.mrf.mxu0 }
 0x1d9   :  { %v325_v30 = vpop.f32.mrf.mxu1  ;;  %v297_v47 = vadd.f32 %v296_v29, %v250_v45 }
 0x1da   :  { %v326_v48 = vadd.f32 %v325_v30, %v250_v45 }
 0x1e0   :  { %v299_v31 = vpop.f32.mrf.mxu0 }
 0x1e1   :  { %v328_v32 = vpop.f32.mrf.mxu1  ;;  %v300_v44 = vadd.f32 %v299_v31, %v255_v41 }
 0x1e2   :  { %v329_v46 = vadd.f32 %v328_v32, %v255_v41 }
 0x1e8   :  { %v302_v33 = vpop.f32.mrf.mxu0 }
 0x1e9   :  { %v331_v34 = vpop.f32.mrf.mxu1  ;;  %v303_v38 = vadd.f32 %v302_v33, %v260_v36 }
 0x1ea   :  { %v332_v42 = vadd.f32 %v331_v34, %v260_v36 }
 0x1f0   :  { %v305_v37 = vpop.f32.mrf.mxu0 }
 0x1f1   :  { %v306_v39 = vadd.f32 %v305_v37, %v265_v35  ;;  %v334_v40 = vpop.f32.mrf.mxu1 }
 0x1f2   :  { %v335_v43 = vadd.f32 %v334_v40, %v265_v35 }
 0x1f3   :  { %549 = vtanh.f32 %v306_v39 }
 0x1f4   :  { %551 = vtanh.f32 %v335_v43 }
 0x1f5   :  { %553 = vtanh.f32 %v303_v38 }
 0x1f6   :  { %555 = vtanh.f32 %v332_v42 }
 0x1f7   :  { %557 = vtanh.f32 %v300_v44 }
 0x1f8   :  { %559 = vtanh.f32 %v329_v46 }
 0x1f9   :  { %v550_v49 = vpop.eup %549  ;;  %561 = vtanh.f32 %v297_v47 }
 0x1fa   :  { %v552_v50 = vpop.eup %551  ;;  %563 = vtanh.f32 %v326_v48  ;;  %399 = vmatpush.msrb.mxu2 %v550_v49 }
 0x1fb   :  { %v554_v51 = vpop.eup %553  ;;  %428 = vmatpush.msrb.mxu3 %v552_v50 }
 0x1fc   :  { %v556_v52 = vpop.eup %555  ;;  %400 = vmatpush.msrb.mxu2 %v554_v51 }
 0x1fd   :  { %v558_v53 = vpop.eup %557  ;;  %429 = vmatpush.msrb.mxu3 %v556_v52 }
 0x1fe   :  { %v560_v54 = vpop.eup %559  ;;  %401 = vmatpush.msrb.mxu2 %v558_v53 }
 0x1ff   :  { %v562_v56 = vpop.eup %561  ;;  %430 = vmatpush.msrb.mxu3 %v560_v54 }
 0x200   :  { %v564_v57 = vpop.eup %563  ;;  %402 = vmatpush.msrb.mxu2 %v562_v56 }
 0x201   :  { %431 = vmatpush.msrb.mxu3 %v564_v57  ;;  %505 = vmatmul.msk.f32.vlgmr.msrb.gmra.mxu2 %vm50_vm0, %v497_v55 }
 0x202   :  { %509 = vmatmul.msk.f32.vlgmr.msrb.gmra.mxu3 %vm50_vm0, %v497_v55 }
 0x209   :  { %506 = vmatmul.msk.f32.gmra.mxu2 %vm50_vm0, %v498_v58 }
 0x20a   :  { %510 = vmatmul.msk.f32.gmra.mxu3 %vm50_vm0, %v498_v58 }
 0x211   :  { %507 = vmatmul.msk.f32.gmra.mxu2 %vm50_vm0, %v499_v59 }
 0x212   :  { %511 = vmatmul.msk.f32.gmra.mxu3 %vm50_vm0, %v499_v59 }
 0x219   :  { %508 = vmatmul.msk.f32.gmra.mxu2 %vm50_vm0, %v500_v60 }
 0x21a   :  { %512 = vmatmul.msk.f32.gmra.mxu3 %vm50_vm0, %v500_v60 }
 0x284   :  { %v404_v62 = vpop.f32.mrf.mxu2 }
 0x285   :  { %v405_v63 = vadd.f32 %v404_v62, %v358_v61  ;;  %v433_v0 = vpop.f32.mrf.mxu3 }
 0x286   :  { %v434_v1 = vadd.f32 %v433_v0, %v358_v61 }
 0x287   :  { %445 = vst [vmem:[%s765_s3] sm:$0xff] %v405_v63 }
 0x288   :  { %446 = vst [vmem:[%s765_s3 + $0x8] sm:$0xff] %v434_v1 }
 0x28c   :  { %v407_v3 = vpop.f32.mrf.mxu2 }
 0x28d   :  { %v408_v4 = vadd.f32 %v407_v3, %v363_v2  ;;  %v436_v5 = vpop.f32.mrf.mxu3 }
 0x28e   :  { %v437_v6 = vadd.f32 %v436_v5, %v363_v2 }
 0x28f   :  { %447 = vst [vmem:[%s765_s3 + $0x10] sm:$0xff] %v408_v4 }
 0x290   :  { %448 = vst [vmem:[%s765_s3 + $0x18] sm:$0xff] %v437_v6 }
 0x294   :  { %v410_v8 = vpop.f32.mrf.mxu2 }
 0x295   :  { %v411_v9 = vadd.f32 %v410_v8, %v368_v7  ;;  %v439_v10 = vpop.f32.mrf.mxu3 }
 0x296   :  { %v440_v11 = vadd.f32 %v439_v10, %v368_v7 }
 0x297   :  { %449 = vst [vmem:[%s765_s3 + $0x20] sm:$0xff] %v411_v9 }
 0x298   :  { %450 = vst [vmem:[%s765_s3 + $0x28] sm:$0xff] %v440_v11 }
 0x29c   :  { %v413_v13 = vpop.f32.mrf.mxu2 }
 0x29d   :  { %v414_v14 = vadd.f32 %v413_v13, %v373_v12  ;;  %v442_v15 = vpop.f32.mrf.mxu3 }
 0x29e   :  { %v443_v16 = vadd.f32 %v442_v15, %v373_v12 }
 0x29f   :  { %451 = vst [vmem:[%s765_s3 + $0x30] sm:$0xff] %v414_v14 }
 0x2a0   :  { %452 = vst [vmem:[%s765_s3 + $0x38] sm:$0xff] %v443_v16 }

</bundles_post_ra>
